<compile_context>
chip_gen: v7x
topology: tpu7x:2x2x1
jax: 0.10.0
libtpu: 0.0.40
codegen_flags: <defaults>
</compile_context>

<pallas_src>
import jax
import jax.numpy as jnp
from jax.experimental import pallas as pl
from jax.experimental.pallas import tpu as pltpu

LATENT_DIM = 8            # opt.latent_dim (synthetic choice; argparse default not in spec)
H1, H2, OUT = 16, 32, 1   # from the module; prod(point_shape) == 1
MAX_TB = 16384            # max batch tile on the lane axis (VMEM-safe on v5e/v6e/v7x)


def _leaky_relu(x, slope=0.2):
    return jnp.where(x > 0, x, slope * x)


def _round_up(n, m):
    return ((n + m - 1) // m) * m


def generator_kernel(z_ref, w1_ref, b1_ref, w2_ref, b2_ref, w3_ref, b3_ref, o_ref):
    # z_ref: (LATENT_DIM, TB) f32 -- batch on the lane axis (lane-dense).
    # Matmul operands -> bf16 (MXU native), accumulate in f32.
    z = z_ref[...].astype(jnp.bfloat16)

    # Layer 1 on MXU: (16, 8)bf16 @ (8, TB)bf16 -> (16, TB)f32
    h1 = jnp.dot(w1_ref[...].astype(jnp.bfloat16), z,
                 preferred_element_type=jnp.float32) + b1_ref[...]
    h1 = _leaky_relu(h1)

    # Layer 2 on MXU: (32, 16)bf16 @ (16, TB)bf16 -> (32, TB)f32
    h2 = jnp.dot(w2_ref[...].astype(jnp.bfloat16), h1.astype(jnp.bfloat16),
                 preferred_element_type=jnp.float32) + b2_ref[...]
    h2 = _leaky_relu(h2)

    # Layer 3 on VPU/XLU (not MXU): 1-row output -> broadcast multiply by the
    # (32, 1) weight column and reduce over the 32 sublanes.  Keeps the
    # saturated MXU-push slot free; VALU/XLU have slack here.  All f32.
    h3 = jnp.sum(w3_ref[...] * h2, axis=0, keepdims=True) + b3_ref[...]

    o_ref[...] = jnp.tanh(h3)


def _pick_tiling(B, tb):
    """Choose (tb, b_pad, grid) with bounded padding and >=2 tiles when possible."""
    b128 = _round_up(max(B, 1), 128)
    if tb is None:
        n_tiles = max(-(-b128 // MAX_TB), 1)          # cdiv
        if b128 >= 256 and n_tiles < 2:
            n_tiles = 2                                # feed both v7x TensorCores
        tb = _round_up(-(-b128 // n_tiles), 128)
    tb = _round_up(tb, 128)                            # lane-axis tile: 128-aligned
    b_pad = _round_up(b128, tb)
    return tb, b_pad, b_pad // tb


def generator_forward_t(zt, params, *, tb=None):
    """Fast path: zt is (LATENT_DIM, B) f32 (lane-dense layout). Returns (B, 1) f32."""
    w1, b1, w2, b2, w3, b3 = params
    B = zt.shape[1]
    tb, b_pad, n_tiles = _pick_tiling(B, tb)

    if b_pad != B:
        zt = jnp.pad(zt, ((0, 0), (0, b_pad - B)))

    # Weights/biases: one full-array block, constant index map -> VMEM-resident.
    const = lambda a: pl.BlockSpec(a.shape, lambda i: (0, 0))

    flops = 2 * b_pad * (LATENT_DIM * H1 + H1 * H2 + H2 * OUT)
    bytes_accessed = 4 * (
        b_pad * (LATENT_DIM + OUT)
        + LATENT_DIM * H1 + H1 + H1 * H2 + H2 + H2 * OUT + OUT
    )

    out_t = pl.pallas_call(
        generator_kernel,
        out_shape=jax.ShapeDtypeStruct((OUT, b_pad), jnp.float32),
        grid=(n_tiles,),
        in_specs=[
            pl.BlockSpec((LATENT_DIM, tb), lambda i: (0, i)),   # z tile
            const(w1), const(b1),
            const(w2), const(b2),
            const(w3), const(b3),
        ],
        out_specs=pl.BlockSpec((OUT, tb), lambda i: (0, i)),
        compiler_params=pltpu.CompilerParams(
            # batch tiles are independent -> megacore sharding on v7x,
            # harmless on v5e/v6e.
            dimension_semantics=("parallel",)),
        cost_estimate=pl.CostEstimate(
            flops=flops, transcendentals=b_pad, bytes_accessed=bytes_accessed),
    )(zt, w1, b1, w2, b2, w3, b3)

    # (1, B) -> (B, 1): pure reshape, no data movement.
    return jnp.reshape(out_t[:, :B], (B, OUT))


def generator_forward(z, params, *, tb=None):
    """PyTorch-compatible signature: z (B, LATENT_DIM) f32 -> (B, 1) f32.

    Prefer sampling the latent noise directly in (LATENT_DIM, B) layout and
    calling generator_forward_t to avoid this extra transpose pass.
    """
    return generator_forward_t(jnp.transpose(z), params, tb=tb)


def init_params(key):
    """Deterministic init mimicking PyTorch Linear default (U(+/- 1/sqrt(fan_in))).

    Kernel layout: w1 (H1, LATENT_DIM), w2 (H2, H1) are (out, in); biases are
    (out, 1); the last layer's weight is stored as a column w3 (H2, OUT) so the
    kernel's broadcast-multiply + sublane-reduce needs no in-kernel transpose.
    """
    ks = jax.random.split(key, 6)

    def lin(kw, kb, fan_in, fan_out):
        bound = 1.0 / float(jnp.sqrt(jnp.float32(fan_in)))
        w = jax.random.uniform(kw, (fan_out, fan_in), jnp.float32, -bound, bound)
        b = jax.random.uniform(kb, (fan_out, 1), jnp.float32, -bound, bound)
        return w, b

    w1, b1 = lin(ks[0], ks[1], LATENT_DIM, H1)
    w2, b2 = lin(ks[2], ks[3], H1, H2)
    w3r, b3 = lin(ks[4], ks[5], H2, OUT)      # w3r: (OUT, H2)
    w3 = jnp.transpose(w3r)                   # stored as (H2, OUT) column
    return (w1, b1, w2, b2, w3, b3)


def reference_forward(z, params):
    """Pure-JAX f32 reference in the PyTorch (batch, features) orientation."""
    w1, b1, w2, b2, w3, b3 = params
    h1 = _leaky_relu(z @ w1.T + b1.T)
    h2 = _leaky_relu(h1 @ w2.T + b2.T)
    return jnp.tanh(h2 @ w3 + b3.T)           # w3 is (H2, OUT)


if __name__ == "__main__":
    key = jax.random.PRNGKey(0)
    k_params, k_z1, k_z2 = jax.random.split(key, 3)

    params = init_params(k_params)

    # bf16 matmul operands -> relaxed tolerance vs the f32 reference.
    ATOL = RTOL = 2e-2

    # Small primary test (batch=2) through the PyTorch-compatible wrapper.
    B = 2
    z = jax.random.normal(k_z1, (B, LATENT_DIM), jnp.float32)
    out = jax.block_until_ready(generator_forward(z, params))
    ref = reference_forward(z, params)
    assert out.shape == (B, 1), out.shape
    assert jnp.allclose(out, ref, atol=ATOL, rtol=RTOL), (out, ref)

    # Multi-tile + non-multiple batch via the fast (LATENT_DIM, B) path:
    # exercises padding, the tiled grid and the "parallel" axis.
    B2 = 300
    zt2 = jax.random.normal(k_z2, (LATENT_DIM, B2), jnp.float32)
    out2 = jax.block_until_ready(generator_forward_t(zt2, params, tb=128))
    ref2 = reference_forward(jnp.transpose(zt2), params)
    assert out2.shape == (B2, 1), out2.shape
    assert jnp.allclose(out2, ref2, atol=ATOL, rtol=RTOL)

    # Adaptive tiling path (no explicit tb): >=2 tiles chosen automatically.
    out3 = jax.block_until_ready(generator_forward_t(zt2, params))
    assert out3.shape == (B2, 1), out3.shape
    assert jnp.allclose(out3, ref2, atol=ATOL, rtol=RTOL)

    print("KERNEL_OK")
</pallas_src>

<mosaic_0001>
module attributes {stable_mosaic.version = 11 : i64} {
  func.func @generator_kernel(%arg0: i32, %arg1: memref<8x128xf32, #tpu.memory_space<vmem>>, %arg2: memref<16x8xf32, #tpu.memory_space<vmem>>, %arg3: memref<16x1xf32, #tpu.memory_space<vmem>>, %arg4: memref<32x16xf32, #tpu.memory_space<vmem>>, %arg5: memref<32x1xf32, #tpu.memory_space<vmem>>, %arg6: memref<32x1xf32, #tpu.memory_space<vmem>>, %arg7: memref<1x1xf32, #tpu.memory_space<vmem>>, %arg8: memref<1x128xf32, #tpu.memory_space<vmem>>) attributes {dimension_semantics = [#tpu.dimension_semantics<parallel>], iteration_bounds = array<i64: 1>, scalar_prefetch = 0 : i64, scratch_operands = 0 : i64, tpu.core_type = #tpu.core_type<tc>, window_params = [{transform_indices = @transform_0, window_bounds = array<i64: 8, 128>}, {pipeline_mode = #tpu.pipeline_mode<synchronous>, transform_indices = @transform_1, window_bounds = array<i64: 16, 8>}, {pipeline_mode = #tpu.pipeline_mode<synchronous>, transform_indices = @transform_2, window_bounds = array<i64: 16, 1>}, {pipeline_mode = #tpu.pipeline_mode<synchronous>, transform_indices = @transform_3, window_bounds = array<i64: 32, 16>}, {pipeline_mode = #tpu.pipeline_mode<synchronous>, transform_indices = @transform_4, window_bounds = array<i64: 32, 1>}, {pipeline_mode = #tpu.pipeline_mode<synchronous>, transform_indices = @transform_5, window_bounds = array<i64: 32, 1>}, {pipeline_mode = #tpu.pipeline_mode<synchronous>, transform_indices = @transform_6, window_bounds = array<i64: 1, 1>}, {transform_indices = @transform_7, window_bounds = array<i64: 1, 128>}]} {
    %c0 = arith.constant 0 : index
    %c0_0 = arith.constant 0 : index
    %0 = vector.load %arg1[%c0, %c0_0] : memref<8x128xf32, #tpu.memory_space<vmem>>, vector<8x128xf32>
    %1 = arith.truncf %0 : vector<8x128xf32> to vector<8x128xbf16>
    %c0_1 = arith.constant 0 : index
    %c0_2 = arith.constant 0 : index
    %2 = vector.load %arg2[%c0_1, %c0_2] : memref<16x8xf32, #tpu.memory_space<vmem>>, vector<16x8xf32>
    %3 = arith.truncf %2 : vector<16x8xf32> to vector<16x8xbf16>
    %cst = arith.constant dense<0.000000e+00> : vector<16x128xf32>
    %4 = tpu.matmul %3, %1, %cst {dimension_numbers = #tpu.dot_dimension_numbers<[1], [0], [0], [1], [0, 0, 1, 1], [], []>} : vector<16x8xbf16>, vector<8x128xbf16>, vector<16x128xf32> -> vector<16x128xf32>
    %c0_3 = arith.constant 0 : index
    %c0_4 = arith.constant 0 : index
    %5 = vector.load %arg3[%c0_3, %c0_4] : memref<16x1xf32, #tpu.memory_space<vmem>>, vector<16x1xf32>
    %6 = vector.broadcast %5 : vector<16x1xf32> to vector<16x128xf32>
    %7 = arith.addf %4, %6 : vector<16x128xf32>
    %cst_5 = arith.constant 0.000000e+00 : f32
    %8 = vector.broadcast %cst_5 : f32 to vector<16x128xf32>
    %9 = arith.cmpf ogt, %7, %8 : vector<16x128xf32>
    %cst_6 = arith.constant 2.000000e-01 : f32
    %10 = vector.broadcast %cst_6 : f32 to vector<16x128xf32>
    %11 = arith.mulf %10, %7 : vector<16x128xf32>
    %12 = arith.select %9, %7, %11 : vector<16x128xi1>, vector<16x128xf32>
    %c0_7 = arith.constant 0 : index
    %c0_8 = arith.constant 0 : index
    %13 = vector.load %arg4[%c0_7, %c0_8] : memref<32x16xf32, #tpu.memory_space<vmem>>, vector<32x16xf32>
    %14 = arith.truncf %13 : vector<32x16xf32> to vector<32x16xbf16>
    %15 = arith.truncf %12 : vector<16x128xf32> to vector<16x128xbf16>
    %cst_9 = arith.constant dense<0.000000e+00> : vector<32x128xf32>
    %16 = tpu.matmul %14, %15, %cst_9 {dimension_numbers = #tpu.dot_dimension_numbers<[1], [0], [0], [1], [0, 0, 1, 1], [], []>} : vector<32x16xbf16>, vector<16x128xbf16>, vector<32x128xf32> -> vector<32x128xf32>
    %c0_10 = arith.constant 0 : index
    %c0_11 = arith.constant 0 : index
    %17 = vector.load %arg5[%c0_10, %c0_11] : memref<32x1xf32, #tpu.memory_space<vmem>>, vector<32x1xf32>
    %18 = vector.broadcast %17 : vector<32x1xf32> to vector<32x128xf32>
    %19 = arith.addf %16, %18 : vector<32x128xf32>
    %cst_12 = arith.constant 0.000000e+00 : f32
    %20 = vector.broadcast %cst_12 : f32 to vector<32x128xf32>
    %21 = arith.cmpf ogt, %19, %20 : vector<32x128xf32>
    %cst_13 = arith.constant 2.000000e-01 : f32
    %22 = vector.broadcast %cst_13 : f32 to vector<32x128xf32>
    %23 = arith.mulf %22, %19 : vector<32x128xf32>
    %24 = arith.select %21, %19, %23 : vector<32x128xi1>, vector<32x128xf32>
    %c0_14 = arith.constant 0 : index
    %c0_15 = arith.constant 0 : index
    %25 = vector.load %arg6[%c0_14, %c0_15] : memref<32x1xf32, #tpu.memory_space<vmem>>, vector<32x1xf32>
    %26 = vector.broadcast %25 : vector<32x1xf32> to vector<32x128xf32>
    %27 = arith.mulf %26, %24 : vector<32x128xf32>
    %cst_16 = arith.constant dense<0.000000e+00> : vector<128xf32>
    %28 = vector.multi_reduction <add>, %27, %cst_16 [0] : vector<32x128xf32> to vector<128xf32>
    %29 = vector.shape_cast %28 : vector<128xf32> to vector<1x128xf32>
    %c0_17 = arith.constant 0 : index
    %c0_18 = arith.constant 0 : index
    %30 = vector.load %arg7[%c0_17, %c0_18] : memref<1x1xf32, #tpu.memory_space<vmem>>, vector<1x1xf32>
    %31 = vector.broadcast %30 : vector<1x1xf32> to vector<1x128xf32>
    %32 = arith.addf %29, %31 : vector<1x128xf32>
    %33 = math.tanh %32 : vector<1x128xf32>
    %c0_19 = arith.constant 0 : index
    %c0_20 = arith.constant 0 : index
    %34 = vector.load %arg8[%c0_19, %c0_20] : memref<1x128xf32, #tpu.memory_space<vmem>>, vector<1x128xf32>
    tpu.vector_store %arg8[%c0_19, %c0_20], %33 {strides = array<i32>} : memref<1x128xf32, #tpu.memory_space<vmem>>, vector<1x128xf32>,
    return
  }
  func.func @transform_0(%arg0: i32) -> (i32, i32) {
    %c0_i32 = arith.constant 0 : i32
    %c0_i32_0 = arith.constant 0 : i32
    return %c0_i32, %arg0 : i32, i32
  }
  func.func @transform_1(%arg0: i32) -> (i32, i32) {
    %c0_i32 = arith.constant 0 : i32
    %c0_i32_0 = arith.constant 0 : i32
    %c0_i32_1 = arith.constant 0 : i32
    return %c0_i32, %c0_i32_0 : i32, i32
  }
  func.func @transform_2(%arg0: i32) -> (i32, i32) {
    %c0_i32 = arith.constant 0 : i32
    %c0_i32_0 = arith.constant 0 : i32
    %c0_i32_1 = arith.constant 0 : i32
    return %c0_i32, %c0_i32_0 : i32, i32
  }
  func.func @transform_3(%arg0: i32) -> (i32, i32) {
    %c0_i32 = arith.constant 0 : i32
    %c0_i32_0 = arith.constant 0 : i32
    %c0_i32_1 = arith.constant 0 : i32
    return %c0_i32, %c0_i32_0 : i32, i32
  }
  func.func @transform_4(%arg0: i32) -> (i32, i32) {
    %c0_i32 = arith.constant 0 : i32
    %c0_i32_0 = arith.constant 0 : i32
    %c0_i32_1 = arith.constant 0 : i32
    return %c0_i32, %c0_i32_0 : i32, i32
  }
  func.func @transform_5(%arg0: i32) -> (i32, i32) {
    %c0_i32 = arith.constant 0 : i32
    %c0_i32_0 = arith.constant 0 : i32
    %c0_i32_1 = arith.constant 0 : i32
    return %c0_i32, %c0_i32_0 : i32, i32
  }
  func.func @transform_6(%arg0: i32) -> (i32, i32) {
    %c0_i32 = arith.constant 0 : i32
    %c0_i32_0 = arith.constant 0 : i32
    %c0_i32_1 = arith.constant 0 : i32
    return %c0_i32, %c0_i32_0 : i32, i32
  }
  func.func @transform_7(%arg0: i32) -> (i32, i32) {
    %c0_i32 = arith.constant 0 : i32
    %c0_i32_0 = arith.constant 0 : i32
    return %c0_i32, %arg0 : i32, i32
  }
}

</mosaic_0001>

<bundles_post_ra>
// kernel: tpu_custom_call.1
= control target key start
LH: loop header
LB: loop body
LE: loop exit
PB: predicated region body
PF: predicated region fallthrough
CT: control target
= control target key end

     0   :  { %s429_s0 = inlined_call_operand.vmem [shape: f32[8,128], index: 0, kind: input, shape index: {}]   ;;  %s430_s1 = inlined_call_operand.vmem [shape: f32[16,8], index: 1, kind: input, shape index: {}]   ;;  %s431_s2 = inlined_call_operand.vmem [shape: f32[16,1], index: 2, kind: input, shape index: {}]   ;;  %s432_s3 = inlined_call_operand.vmem [shape: f32[32,16], index: 3, kind: input, shape index: {}]   ;;  %s433_s4 = inlined_call_operand.vmem [shape: f32[32,1], index: 4, kind: input, shape index: {}]   ;;  %s434_s5 = inlined_call_operand.vmem [shape: f32[32,1], index: 5, kind: input, shape index: {}]   ;;  %s435_s6 = inlined_call_operand.<no memory space> [shape: f32[1,1], index: 6, kind: input, shape index: {}]   ;;  %s436_s7 = inlined_call_operand.hbm [shape: f32[1,128], index: 7, kind: output, shape index: {}]  }
   0x1   :  { %v12_v0 = vstv %s435_s6 }
   0x2   :  { %13 = vst [vmem:[#allocation2] sm:$0x1] %v12_v0 }
   0x3   :  { %v30_v1 = vld [vmem:[%s429_s0] sm:$0xff]  ;;  %vm51_vm0 = vcmask 1043456   ;;  %v33_v3 = vld [vmem:[%s430_s1 + $0x8] sm:$0xff]  ;;  %v317_v4 = vmov 0.0   ;;  %vm318_vm1 = vmmov 0   ;;  %v319_v7 = vmov 0  }
   0x4   :  { %v32_v2 = vld [vmem:[%s430_s1] sm:$0xff]  ;;  %273 = vmatprep.subr.bf16.mxu0 %v317_v4  ;;  %v31_v5 = vpack.c.bf16 %v30_v1, %v30_v1  ;;  %275 = vmatprep.mubr.msk.bf16.mxu0 %vm318_vm1, %v317_v4 }
   0x5   :  { %v35_v6 = vld [vmem:[%s431_s2] sm:$0xff]  ;;  %289 = vset.pattern.permute.xlu0 %v319_v7  ;;  %290 = vset.pattern.permute.xlu1 %v319_v7  ;;  %v34_v9 = vpack.c.bf16 %v33_v3, %v32_v2 }
   0x6   :  { %v53_v8 = vsel %vm51_vm0, %v31_v5, 0  ;;  %39 = vperm.xlu0 %289, %v35_v6  }
   0x7   :  { %14 = vsyncpa [#allocation4], 0  ;;  %274 = vmatpush3.bf16.msra.mxu0 %v53_v8  ;;  %vm47_vm2 = vcmask 64512   ;;  %v36_v10 = vld [vmem:[%s431_s2 + $0x8] sm:$0xff]  ;;  %v111_v11 = vld [vmem:[%s433_s4 + $0x10] sm:$0xff]  ;;  %vm133_vm3 = vcmask 130048   ;;  %v244_v5 = vlaneseq }
   0x8   :  { %v201_v12 = vld [vmem:[%s434_s5] sm:$0xff]  ;;  %v203_v13 = vld [vmem:[%s434_s5 + $0x10] sm:$0xff]  ;;  %v103_v16 = vld [vmem:[%s432_s3 + $0x8] sm:$0xff] }
   0x9   :  { %v238_v14 = vld [vmem:[#allocation2] sm:$0x1]  ;;  %v110_v19 = vld [vmem:[%s433_s4 + $0x8] sm:$0xff]  ;;  %v112_v20 = vld [vmem:[%s433_s4 + $0x18] sm:$0xff]  ;;  %v245_v8 = vshrl.u32 %v244_v5, 7 }
   0xa   :  { %276 = vmatmul.mubr.msk.bf16.vlgmr.msra.gmra.mrb[0].mxu0 %vm47_vm2, %v34_v9  ;;  %44 = vperm.xlu0 %289, %v36_v10   ;;  %v102_v15 = vld [vmem:[%s432_s3] sm:$0xff]  ;;  %v202_v21 = vld [vmem:[%s434_s5 + $0x8] sm:$0xff]  ;;  %v204_v22 = vld [vmem:[%s434_s5 + $0x18] sm:$0xff] }
   0xb   :  { %v106_v17 = vpack.c.bf16 %v103_v16, %v102_v15  ;;  %v109_v18 = vld [vmem:[%s433_s4] sm:$0xff]  ;;  %v104_v35 = vld [vmem:[%s432_s3 + $0x10] sm:$0xff]  ;;  %v105_v36 = vld [vmem:[%s432_s3 + $0x18] sm:$0xff]  ;;  %s320_s3 = smov [#allocation3]  }
   0xc   :  { %115 = vperm.xlu1 %290, %v109_v18   ;;  %v107_v38 = vpack.c.bf16 %v105_v36, %v104_v35  ;;  %s257_s8 = sshll.u32 %s320_s3, 4  ;;  %s258_s8 = int_to_ptr.vmem [resolvable:$true] %s257_s8 }
   0xd   :  { %281 = vmatprep.mubr.msk.bf16.mxu1 %vm133_vm3, %v106_v17  ;;  %s293_s6 = scalar_lea.vmem %s258_s8, 16  ;;  %s297_s9 = scalar_lea.vmem %s258_s8, 32 }
   0xe   :  { %125 = vperm.xlu0 %289, %v111_v11   ;;  %v246_v11 = vsub.s32 0, %v245_v8  ;;  %p294_p0 = scmp.ne.s32.totalorder %s258_s8, %s293_s6  ;;  %p298_p1 = scmp.lt.s32.totalorder %s258_s8, %s258_s8 }
   0xf   :  { %p299_p2 = scmp.lt.s32.totalorder %s297_s9, %s293_s6 }
  0x10   :  { %120 = vperm.xlu1 %290, %v110_v19  }
  0x11   :  { %p300_p3 = por %p299_p2, %p298_p1 }
  0x12   :  { %207 = vperm.xlu0 %289, %v201_v12  }
  0x13   :  { %p301_p4 = pnand %p300_p3, %p294_p0 }
  0x14   :  { %130 = vperm.xlu1 %290, %v112_v20  }
  0x16   :  { %217 = vperm.xlu0 %289, %v203_v13  }
  0x18   :  { %212 = vperm.xlu1 %290, %v202_v21  }
  0x1a   :  { %241 = vperm.xlu0 %289, %v238_v14  }
  0x1c   :  { %222 = vperm.xlu1 %290, %v204_v22  }
  0x85   :  { %v40_v23 = vpop.permute.xlu0 %39 }
  0x89   :  { %v45_v27 = vpop.permute.xlu0 %44 }
  0x8b   :  { %v116_v39 = vpop.permute.xlu1 %115 }
  0x8d   :  { %v126_v41 = vpop.permute.xlu0 %125 }
  0x8f   :  { %v121_v40 = vpop.permute.xlu1 %120 }
  0x91   :  { %v208_v50 = vpop.permute.xlu0 %207 }
  0x93   :  { %v131_v42 = vpop.permute.xlu1 %130 }
  0x95   :  { %v218_v62 = vpop.permute.xlu0 %217 }
  0x97   :  { %v213_v54 = vpop.permute.xlu1 %212 }
  0x99   :  { %v242_v13 = vpop.permute.xlu0 %241 }
  0x9a   :  { %v247_v15 = vrot.slane %v242_v13, %v246_v11 }
  0x9b   :  { %v223_v2 = vpop.permute.xlu1 %222 }
  0xdd   :  { %v89_v24 = vpop.f32.mrb[0].mxu0 }
  0xde   :  { %v90_v25 = vadd.f32 %v89_v24, %v40_v23  ;;  %v277_v26 = vpop.f32.mrb[1].mxu0 }
  0xdf   :  { %v92_v28 = vpop.f32.mrb[2].mxu0 }
  0xe0   :  { %v98_v29 = vmul.f32 0.2, %v90_v25  ;;  %v93_v30 = vadd.f32 %v92_v28, %v45_v27  ;;  %v278_v31 = vpop.f32.mrb[3].mxu0  ;;  %vm96_vm4 = vcmp.gt.f32.partialorder %v90_v25, 0.0 }
  0xe2   :  { %v99_v32 = vmul.f32 0.2, %v93_v30  ;;  %vm97_vm5 = vcmp.gt.f32.partialorder %v93_v30, 0.0  ;;  %v100_v33 = vsel %vm96_vm4, %v90_v25, %v98_v29 }
  0xe4   :  { %v101_v34 = vsel %vm97_vm5, %v93_v30, %v99_v32 }
  0xe5   :  { %v108_v37 = vpack.c.bf16 %v101_v34, %v100_v33 }
  0xe7   :  { %279 = vmatprep.subr.bf16.mxu1 %v108_v37 }
  0xe8   :  { %280 = vmatpush3.bf16.msra.mxu1 %v108_v37 }
  0xeb   :  { %282 = vmatmul.mubr.msk.bf16.vlgmr.msra.gmra.mrb[0].mxu1 %vm133_vm3, %v107_v38 }
 0x1be   :  { %v283_v43 = vpop.f32.mrb[0].mxu1 }
 0x1bf   :  { %v183_v44 = vadd.f32 %v283_v43, %v126_v41  ;;  %v174_v45 = vpop.f32.mrb[1].mxu1 }
 0x1c0   :  { %v175_v46 = vadd.f32 %v174_v45, %v116_v39  ;;  %v284_v47 = vpop.f32.mrb[2].mxu1 }
 0x1c1   :  { %v186_v48 = vadd.f32 %v284_v47, %v131_v42  ;;  %v177_v49 = vpop.f32.mrb[3].mxu1  ;;  %v195_v51 = vmul.f32 0.2, %v183_v44  ;;  %vm191_vm7 = vcmp.gt.f32.partialorder %v183_v44, 0.0 }
 0x1c2   :  { %vm189_vm6 = vcmp.gt.f32.partialorder %v175_v46, 0.0  ;;  %v193_v52 = vmul.f32 0.2, %v175_v46  ;;  %v178_v53 = vadd.f32 %v177_v49, %v121_v40 }
 0x1c3   :  { %v196_v56 = vmul.f32 0.2, %v186_v48  ;;  %vm192_vm9 = vcmp.gt.f32.partialorder %v186_v48, 0.0  ;;  %v199_v58 = vsel %vm191_vm7, %v183_v44, %v195_v51 }
 0x1c4   :  { %v197_v55 = vsel %vm189_vm6, %v175_v46, %v193_v52  ;;  %vm190_vm8 = vcmp.gt.f32.partialorder %v178_v53, 0.0  ;;  %v194_v57 = vmul.f32 0.2, %v178_v53  ;;  %v227_v0 = vmul.f32 %v218_v62, %v199_v58 }
 0x1c5   :  { %v225_v60 = vmul.f32 %v208_v50, %v197_v55  ;;  %v200_v63 = vsel %vm192_vm9, %v186_v48, %v196_v56 }
 0x1c6   :  { %v198_v59 = vsel %vm190_vm8, %v178_v53, %v194_v57  ;;  %v228_v3 = vmul.f32 %v223_v2, %v200_v63 }
 0x1c7   :  { %v226_v61 = vmul.f32 %v213_v54, %v198_v59 }
 0x1c9   :  { %v229_v1 = vadd.f32 %v226_v61, %v225_v60 }
 0x1cb   :  { %v230_v4 = vadd.f32 %v229_v1, %v227_v0 }
 0x1cd   :  { %v231_v6 = vadd.f32 %v230_v4, %v228_v3 }
 0x1cf   :  { %v232_v7 = vrot.slane %v231_v6, 4 }
 0x1d1   :  { %v233_v9 = vadd.f32 %v232_v7, %v231_v6 }
 0x1d3   :  { %v234_v10 = vrot.slane %v233_v9, 2 }
 0x1d5   :  { %v235_v12 = vadd.f32 %v234_v10, %v233_v9 }
 0x1d7   :  { %v236_v14 = vrot.slane %v235_v12, 1 }
 0x1d9   :  { %v237_v16 = vadd.f32 %v236_v14, %v235_v12 }
 0x1db   :  { %v248_v17 = vadd.f32 %v247_v15, %v237_v16 }
 0x1dd   :  { %291 = vtanh.f32 %v248_v17 }
 0x1e7   :  { %v292_v18 = vpop.eup %291 }
 0x1e8   :  { %250 = vst [vmem:[#allocation3] sm:$0x1] %v292_v18 }
 0x1e9   :  { %304 = shalt.err (!%p301_p4)
}
 0x1ea   :  { %s305_s10 = scalar_lea.hbm %s436_s7, 16 }
 0x1eb   :  { %p306_p5 = scmp.ne.s32.totalorder %s436_s7, %s305_s10  ;;  %p309_p6 = scmp.lt.u32.totalorder %s305_s10, %s436_s7 }
 0x1ed   :  { %p311_p7 = pnand %p309_p6, %p306_p5 }
 0x1ef   :  { %314 = shalt.err (!%p311_p7)
}
 0x1f0   :  { %260 = dma.vmem_to_hbm [thread:$0]  %s258_s8, 16, %s436_s7, [#allocation4]  }
 0x1f1   :  { %315 = dma.done.wait [#allocation4], 16  }
 0x1f2   :  { %316 = vsyncadd [#allocation4], 4294967280 }
 0x1f3   :  { %264 = vsyncpa [#allocation4], 1 }

</bundles_post_ra>
